<compile_context>
chip_gen: v7x
topology: tpu7x:2x2x1
jax: 0.10.0
libtpu: 0.0.40
codegen_flags: <defaults>
</compile_context>

<pallas_src>
import math
import functools

import jax
import jax.numpy as jnp
from jax.experimental import pallas as pl
from jax.experimental.pallas import tpu as pltpu


def _round_up(x, m):
    return (x + m - 1) // m * m


def _embedding_gather_kernel(ids_ref, lut_hbm, out_ref, gbuf, sem, *,
                             t_tile, scale):
    """Double-buffered DMA row-gather + scale.

    ids_ref : SMEM (n_tok_pad,) int32   -- scalar-prefetched token ids
    lut_hbm : HBM  (vocab, d_pad)       -- embedding table, left in HBM
    out_ref : VMEM (t_tile, d_pad)      -- output block for this grid step
    gbuf    : VMEM (2, t_tile, d_pad)   -- double-buffered gather scratch
    sem     : DMA semaphores (2,)       -- one per gather slot
    """
    step = pl.program_id(0)
    nsteps = pl.num_programs(0)
    slot = step % 2

    def issue(s, buf_slot):
        base = s * t_tile

        @pl.loop(0, t_tile)
        def _(j):
            row = ids_ref[base + j]
            pltpu.make_async_copy(
                lut_hbm.at[pl.ds(row, 1), :],
                gbuf.at[buf_slot, pl.ds(j, 1), :],
                sem.at[buf_slot],
            ).start()

    def wait_all(buf_slot):
        # All row copies are the same size and share one semaphore per slot,
        # so waiting once per issued copy (with a same-shaped descriptor)
        # drains the slot regardless of completion order.
        @pl.loop(0, t_tile)
        def _(j):
            pltpu.make_async_copy(
                lut_hbm.at[pl.ds(0, 1), :],
                gbuf.at[buf_slot, pl.ds(0, 1), :],
                sem.at[buf_slot],
            ).wait()

    # Prime the pipeline on the first step.
    @pl.when(step == 0)
    def _():
        issue(step, slot)

    # Prefetch the next step's rows into the other slot while this step's
    # rows are already in flight / being consumed.
    @pl.when(step + 1 < nsteps)
    def _():
        issue(step + 1, 1 - slot)

    wait_all(slot)

    # Single lane-dense store with sqrt(d_model) folded in.
    out_ref[...] = (gbuf[slot] * scale).astype(out_ref.dtype)


def embeddings_forward(x, lut, *, t_tile=128):
    """Pallas equivalent of Embeddings.forward: lut[x] * sqrt(d_model)."""
    b, s = x.shape
    vocab, d_model = lut.shape
    n_tok = b * s
    scale = float(math.sqrt(d_model))

    # Lane-dense output: pad the feature dim up to a multiple of 128.
    # TODO(synk): in a real model, store the table pre-padded to avoid this copy.
    d_pad = _round_up(d_model, 128)
    lut_p = lut if d_pad == d_model else jnp.pad(
        lut, ((0, 0), (0, d_pad - d_model)))

    # Token tile: multiple of 8 (sublanes), no larger than the padded token count.
    t_tile = max(8, min(_round_up(t_tile, 8), _round_up(n_tok, 8)))
    n_tok_pad = _round_up(n_tok, t_tile)

    ids = x.reshape(n_tok).astype(jnp.int32)
    if n_tok_pad != n_tok:
        ids = jnp.pad(ids, (0, n_tok_pad - n_tok))   # pad with row 0, sliced off below

    kernel = functools.partial(_embedding_gather_kernel,
                               t_tile=t_tile, scale=scale)

    out_flat = pl.pallas_call(
        kernel,
        out_shape=jax.ShapeDtypeStruct((n_tok_pad, d_pad), lut.dtype),
        grid_spec=pltpu.PrefetchScalarGridSpec(
            num_scalar_prefetch=1,                      # ids -> SMEM
            grid=(n_tok_pad // t_tile,),
            in_specs=[
                pl.BlockSpec(memory_space=pl.ANY),      # table stays in HBM
            ],
            out_specs=pl.BlockSpec((t_tile, d_pad), lambda i, ids: (i, 0)),
            scratch_shapes=[
                pltpu.VMEM((2, t_tile, d_pad), lut.dtype),  # gather double-buffer
                pltpu.SemaphoreType.DMA((2,)),              # per-slot DMA sems
            ],
        ),
        # Cross-step prefetch carries state across iterations -> "arbitrary".
        compiler_params=pltpu.CompilerParams(
            dimension_semantics=("arbitrary",)),
    )(ids, lut_p)

    return out_flat[:n_tok, :d_model].reshape(b, s, d_model)


if __name__ == "__main__":
    key = jax.random.PRNGKey(0)
    k_lut, k_ids = jax.random.split(key)

    batch, seq = 2, 8
    vocab, d_model = 48, 32

    # nn.Embedding default init is N(0, 1) — deterministic synthetic weights.
    lut = jax.random.normal(k_lut, (vocab, d_model), dtype=jnp.float32)
    x = jax.random.randint(k_ids, (batch, seq), 0, vocab, dtype=jnp.int32)

    out = embeddings_forward(x, lut)
    out = jax.block_until_ready(out)

    # Reference check (plain JAX): lut[x] * sqrt(d_model)
    ref = jnp.take(lut, x, axis=0) * math.sqrt(d_model)
    assert out.shape == (batch, seq, d_model)
    assert jnp.allclose(out, ref, atol=1e-5, rtol=1e-5)

    print("KERNEL_OK")
</pallas_src>

<mosaic_0001>
module attributes {stable_mosaic.version = 11 : i64} {
  func.func @_embedding_gather_kernel(%arg0: i32, %arg1: memref<16xi32, #tpu.memory_space<smem>>, %arg2: memref<48x128xf32, #tpu.memory_space<any>>, %arg3: memref<16x128xf32, #tpu.memory_space<vmem>>, %arg4: memref<2x16x128xf32, #tpu.memory_space<vmem>>, %arg5: memref<2x!tpu.dma_semaphore, #tpu.memory_space<semaphore_mem>>) attributes {dimension_semantics = [#tpu.dimension_semantics<arbitrary>], iteration_bounds = array<i64: 1>, scalar_prefetch = 1 : i64, scratch_operands = 2 : i64, tpu.core_type = #tpu.core_type<tc>, window_params = [{}, {transform_indices = @transform_1, window_bounds = array<i64: 16, 128>}]} {
    %c2_i32 = arith.constant 2 : i32
    %c0_i32 = arith.constant 0 : i32
    %0 = arith.cmpi eq, %c2_i32, %c0_i32 : i32
    %c1_i32 = arith.constant 1 : i32
    %1 = arith.select %0, %c1_i32, %c2_i32 : i32
    %2 = arith.remsi %arg0, %1 : i32
    %c0_i32_0 = arith.constant 0 : i32
    %3 = arith.cmpi ne, %2, %c0_i32_0 : i32
    %c0_i32_1 = arith.constant 0 : i32
    %4 = arith.cmpi slt, %2, %c0_i32_1 : i32
    %c0_i32_2 = arith.constant 0 : i32
    %5 = arith.cmpi slt, %1, %c0_i32_2 : i32
    %6 = arith.xori %4, %5 : i1
    %7 = arith.andi %6, %3 : i1
    %8 = arith.addi %2, %1 : i32
    %9 = arith.select %7, %8, %2 : i32
    %c0_i32_3 = arith.constant 0 : i32
    %10 = arith.cmpi eq, %arg0, %c0_i32_3 : i32
    %11 = arith.extui %10 : i1 to i32
    %c0_i32_4 = arith.constant 0 : i32
    %12 = arith.cmpi ne, %11, %c0_i32_4 : i32
    scf.if %12 {
      %c16_i32_13 = arith.constant 16 : i32
      %24 = arith.muli %arg0, %c16_i32_13 : i32
      %c0_i32_14 = arith.constant 0 : i32
      %c16_i32_15 = arith.constant 16 : i32
      %25 = arith.addi %c0_i32_14, %c16_i32_15 : i32
      %c1_i32_16 = arith.constant 1 : i32
      scf.for %arg6 = %c0_i32_14 to %25 step %c1_i32_16  : i32 {
        %c1_i32_18 = arith.constant 1 : i32
        %26 = arith.muli %arg6, %c1_i32_18 : i32
        %c0_i32_19 = arith.constant 0 : i32
        %27 = arith.addi %c0_i32_19, %26 : i32
        %28 = arith.addi %24, %27 : i32
        %29 = arith.index_cast %28 : i32 to index
        %30 = memref.load %arg1[%29] : memref<16xi32, #tpu.memory_space<smem>>
        %c0_i32_20 = arith.constant 0 : i32
        %31 = tpu.memref_slice %arg2[%30, %c0_i32_20] : memref<48x128xf32, #tpu.memory_space<any>> -> memref<1x128xf32, #tpu.memory_space<any>>
        %c0_i32_21 = arith.constant 0 : i32
        %32 = tpu.memref_slice %arg4[%9, %27, %c0_i32_21] : memref<2x16x128xf32, #tpu.memory_space<vmem>> -> memref<1x1x128xf32, #tpu.memory_space<vmem>>
        %33 = tpu.memref_squeeze %32 : memref<1x1x128xf32, #tpu.memory_space<vmem>> -> memref<1x128xf32, #tpu.memory_space<vmem>>
        %34 = tpu.memref_slice %arg5[%9] : memref<2x!tpu.dma_semaphore, #tpu.memory_space<semaphore_mem>> -> memref<1x!tpu.dma_semaphore, #tpu.memory_space<semaphore_mem>>
        %35 = tpu.memref_squeeze %34 : memref<1x!tpu.dma_semaphore, #tpu.memory_space<semaphore_mem>> -> memref<!tpu.dma_semaphore, #tpu.memory_space<semaphore_mem>>
        tpu.enqueue_dma source(%31 : memref<1x128xf32, #tpu.memory_space<any>>) target(%33 : memref<1x128xf32, #tpu.memory_space<vmem>>) target_semaphore(%35 : memref<!tpu.dma_semaphore, #tpu.memory_space<semaphore_mem>>)
      }
      %c16_i32_17 = arith.constant 16 : i32
    } else {
    }
    %c1_i32_5 = arith.constant 1 : i32
    %13 = arith.addi %arg0, %c1_i32_5 : i32
    %c1_i32_6 = arith.constant 1 : i32
    %14 = arith.cmpi slt, %13, %c1_i32_6 : i32
    %15 = arith.extui %14 : i1 to i32
    %c0_i32_7 = arith.constant 0 : i32
    %16 = arith.cmpi ne, %15, %c0_i32_7 : i32
    scf.if %16 {
      %c1_i32_13 = arith.constant 1 : i32
      %24 = arith.addi %arg0, %c1_i32_13 : i32
      %c1_i32_14 = arith.constant 1 : i32
      %25 = arith.subi %c1_i32_14, %9 : i32
      %c16_i32_15 = arith.constant 16 : i32
      %26 = arith.muli %24, %c16_i32_15 : i32
      %c0_i32_16 = arith.constant 0 : i32
      %c16_i32_17 = arith.constant 16 : i32
      %27 = arith.addi %c0_i32_16, %c16_i32_17 : i32
      %c1_i32_18 = arith.constant 1 : i32
      scf.for %arg6 = %c0_i32_16 to %27 step %c1_i32_18  : i32 {
        %c1_i32_20 = arith.constant 1 : i32
        %28 = arith.muli %arg6, %c1_i32_20 : i32
        %c0_i32_21 = arith.constant 0 : i32
        %29 = arith.addi %c0_i32_21, %28 : i32
        %30 = arith.addi %26, %29 : i32
        %31 = arith.index_cast %30 : i32 to index
        %32 = memref.load %arg1[%31] : memref<16xi32, #tpu.memory_space<smem>>
        %c0_i32_22 = arith.constant 0 : i32
        %33 = tpu.memref_slice %arg2[%32, %c0_i32_22] : memref<48x128xf32, #tpu.memory_space<any>> -> memref<1x128xf32, #tpu.memory_space<any>>
        %c0_i32_23 = arith.constant 0 : i32
        %34 = tpu.memref_slice %arg4[%25, %29, %c0_i32_23] : memref<2x16x128xf32, #tpu.memory_space<vmem>> -> memref<1x1x128xf32, #tpu.memory_space<vmem>>
        %35 = tpu.memref_squeeze %34 : memref<1x1x128xf32, #tpu.memory_space<vmem>> -> memref<1x128xf32, #tpu.memory_space<vmem>>
        %36 = tpu.memref_slice %arg5[%25] : memref<2x!tpu.dma_semaphore, #tpu.memory_space<semaphore_mem>> -> memref<1x!tpu.dma_semaphore, #tpu.memory_space<semaphore_mem>>
        %37 = tpu.memref_squeeze %36 : memref<1x!tpu.dma_semaphore, #tpu.memory_space<semaphore_mem>> -> memref<!tpu.dma_semaphore, #tpu.memory_space<semaphore_mem>>
        tpu.enqueue_dma source(%33 : memref<1x128xf32, #tpu.memory_space<any>>) target(%35 : memref<1x128xf32, #tpu.memory_space<vmem>>) target_semaphore(%37 : memref<!tpu.dma_semaphore, #tpu.memory_space<semaphore_mem>>)
      }
      %c16_i32_19 = arith.constant 16 : i32
    } else {
    }
    %c0_i32_8 = arith.constant 0 : i32
    %c16_i32 = arith.constant 16 : i32
    %17 = arith.addi %c0_i32_8, %c16_i32 : i32
    %c1_i32_9 = arith.constant 1 : i32
    scf.for %arg6 = %c0_i32_8 to %17 step %c1_i32_9  : i32 {
      %c0_i32_13 = arith.constant 0 : i32
      %c0_i32_14 = arith.constant 0 : i32
      %24 = tpu.memref_slice %arg2[%c0_i32_13, %c0_i32_14] : memref<48x128xf32, #tpu.memory_space<any>> -> memref<1x128xf32, #tpu.memory_space<any>>
      %c0_i32_15 = arith.constant 0 : i32
      %c0_i32_16 = arith.constant 0 : i32
      %25 = tpu.memref_slice %arg4[%9, %c0_i32_15, %c0_i32_16] : memref<2x16x128xf32, #tpu.memory_space<vmem>> -> memref<1x1x128xf32, #tpu.memory_space<vmem>>
      %26 = tpu.memref_squeeze %25 : memref<1x1x128xf32, #tpu.memory_space<vmem>> -> memref<1x128xf32, #tpu.memory_space<vmem>>
      %27 = tpu.memref_slice %arg5[%9] : memref<2x!tpu.dma_semaphore, #tpu.memory_space<semaphore_mem>> -> memref<1x!tpu.dma_semaphore, #tpu.memory_space<semaphore_mem>>
      %28 = tpu.memref_squeeze %27 : memref<1x!tpu.dma_semaphore, #tpu.memory_space<semaphore_mem>> -> memref<!tpu.dma_semaphore, #tpu.memory_space<semaphore_mem>>
      tpu.wait_dma2 semaphore(%28 : memref<!tpu.dma_semaphore, #tpu.memory_space<semaphore_mem>>) src(%24 : memref<1x128xf32, #tpu.memory_space<any>>) dst(%26 : memref<1x128xf32, #tpu.memory_space<vmem>>)
    }
    %18 = arith.index_cast %9 : i32 to index
    %c0 = arith.constant 0 : index
    %c0_10 = arith.constant 0 : index
    %19 = vector.load %arg4[%18, %c0, %c0_10] : memref<2x16x128xf32, #tpu.memory_space<vmem>>, vector<1x16x128xf32>
    %20 = vector.shape_cast %19 : vector<1x16x128xf32> to vector<16x128xf32>
    %cst = arith.constant 5.65685415 : f32
    %21 = vector.broadcast %cst : f32 to vector<16x128xf32>
    %22 = arith.mulf %20, %21 : vector<16x128xf32>
    %c0_11 = arith.constant 0 : index
    %c0_12 = arith.constant 0 : index
    %23 = vector.load %arg3[%c0_11, %c0_12] : memref<16x128xf32, #tpu.memory_space<vmem>>, vector<16x128xf32>
    tpu.vector_store %arg3[%c0_11, %c0_12], %22 {strides = array<i32>} : memref<16x128xf32, #tpu.memory_space<vmem>>, vector<16x128xf32>,
    return
  }
  func.func @transform_1(%arg0: i32, %arg1: memref<16xi32, #tpu.memory_space<smem>>) -> (i32, i32) {
    %c0_i32 = arith.constant 0 : i32
    %c0_i32_0 = arith.constant 0 : i32
    return %arg0, %c0_i32 : i32, i32
  }
}

</mosaic_0001>

<bundles_post_ra>
// kernel: tpu_custom_call.1
= control target key start
LH: loop header
LB: loop body
LE: loop exit
PB: predicated region body
PF: predicated region fallthrough
CT: control target
= control target key end

     0   :  { %s327_s0 = inlined_call_operand.hbm [shape: s32[16], index: 0, kind: input, shape index: {}]   ;;  %s328_s1 = inlined_call_operand.hbm [shape: f32[48,128], index: 1, kind: input, shape index: {}]   ;;  %s329_s2 = inlined_call_operand.hbm [shape: f32[16,128], index: 2, kind: output, shape index: {}]  }
   0x1   :  { %s186_s11 = scalar_lea.hbm %s327_s0, 16 }
   0x2   :  { %p187_p0 = scmp.ne.s32.totalorder %s327_s0, %s186_s11  ;;  %p190_p1 = scmp.lt.u32.totalorder %s186_s11, %s327_s0 }
   0x4   :  { %p192_p2 = pnand %p190_p1, %p187_p0 }
   0x6   :  { %195 = shalt.err (!%p192_p2)  }
   0x7   :  { %s264_s16 = smov [#allocation5]  }
   0x8   :  { %8 = dma.hbm_to_smem %s327_s0, 16, %s264_s16, [#allocation4] }
   0x9   :  { %250 = dma.done.wait [#allocation4], 16 }
   0xa   :  { %251 = vsyncadd [#allocation4], 4294967280 }
   0xb   :  { %10 = sfence }
   0xc   :  { %11 = vsyncpa [#allocation7], 0  ;;  %s296_s19 = smov 0  }
   0xd LB: > { %s32_s20 = sld [smem:[#allocation5 + %s258_s19]]  ;;  %s37_s21 = scalar_lea.vmem [#allocation2], %s258_s19  ;;  %s258_s19 = sphi %s296_s19, %s30_s19  }
   0xe   : > { %s46_s22 = sshll.u32 %s37_s21, 4  ;;  %s198_s29 = scalar_lea.hbm %s328_s1, 768  ;;  %s47_s22 = int_to_ptr.vmem [resolvable:$true] %s46_s22 }
  0x13   : > { %s159_s23 = sshll.u32 %s32_s20, 4 }
  0x14   : > { %s34_s25 = scalar_lea.hbm %s328_s1, %s159_s23 }
  0x15   : > { %s196_s26 = scalar_lea.hbm %s34_s25, 16  ;;  %p199_p4 = scmp.lt.u32.totalorder %s34_s25, %s328_s1 }
  0x16   : > { %p197_p3 = scmp.ne.s32.totalorder %s34_s25, %s196_s26  ;;  %p200_p5 = scmp.lt.u32.totalorder %s198_s29, %s196_s26 }
  0x17   : > { %p202_p7 = scmp.lt.u32.totalorder %s196_s26, %s34_s25 }
  0x18   : > { %p201_p6 = por %p200_p5, %p199_p4 }
  0x1a   : > { %p203_p8 = por %p202_p7, %p201_p6 }
  0x1c   : > { %p204_p9 = pnand %p203_p8, %p197_p3 }
  0x1e   : > { %207 = shalt.err (!%p204_p9)  }
  0x1f   : > { %s208_s4 = scalar_lea.vmem %s47_s22, 16  ;;  %s265_s5 = smov [#allocation2]  }
  0x20   : > { %p209_p10 = scmp.ne.s32.totalorder %s47_s22, %s208_s4  ;;  %s210_s6 = sshll.u32 %s265_s5, 4  ;;  %s211_s6 = int_to_ptr.vmem [resolvable:$false] %s210_s6 }
  0x21   : > { %s212_s7 = scalar_lea.vmem %s211_s6, 512  ;;  %p213_p11 = scmp.lt.s32.totalorder %s47_s22, %s211_s6 }
  0x22   : > { %p214_p12 = scmp.lt.s32.totalorder %s212_s7, %s208_s4 }
  0x24   : > { %p215_p13 = por %p214_p12, %p213_p11 }
  0x26   : > { %p216_p0 = pnand %p215_p13, %p209_p10 }
  0x28   : > { %219 = shalt.err (!%p216_p0)  }
  0x29   : > { %49 = dma.hbm_to_vmem [thread:$0]  %s34_s25, 16, %s47_s22, [#allocation3] }
  0x2a   : > { %s30_s19 = sadd.s32 1, %s258_s19  }
  0x2b   : > { %p27_p1 = scmp.ge.s32.totalorder %s30_s19, 16  }
  0x2c   :  { %s260_s8 = smov (%p27_p1), 0  }
  0x2d   :  { %29 = sbr.rel (!%p27_p1) target bundleno = 13 (0xd), region = 66 }
  0x34 LB: > { %252 = dma.done.wait [#allocation3], 16  ;;  %s262_s8 = sphi %s260_s8, %s87_s8  }
  0x35   : > { %253 = vsyncadd [#allocation3], 4294967280  ;;  %s87_s8 = sadd.s32 1, %s262_s8  }
  0x36   : > { %p84_p2 = scmp.ge.s32.totalorder %s87_s8, 16  }
  0x37   :  { %v94_v0 = vld [vmem:[#allocation2] sm:$0xff] (%p84_p2)  ;;  %v95_v1 = vld [vmem:[#allocation2 + $0x8] sm:$0xff] (%p84_p2)  ;;  %s266_s9 = smov (%p84_p2), [#allocation6]  }
  0x38   :  { %86 = sbr.rel (!%p84_p2) target bundleno = 52 (0x34), region = 88  ;;  %v96_v2 = vmul.f32 (%p84_p2), 5.656854, %v94_v0  ;;  %v97_v3 = vmul.f32 (%p84_p2), 5.656854, %v95_v1  ;;  %s105_s10 = sshll.u32 (%p84_p2), %s266_s9, 4  ;;  %s106_s10 = int_to_ptr.vmem [resolvable:$true] %s105_s10 }
  0x39   :  { %s220_s11 = scalar_lea.vmem (%p84_p2), %s106_s10, 256  ;;  %p225_p4 = scmp.lt.s32.totalorder (%p84_p2), %s106_s10, %s106_s10 }
  0x3a   :  { %98 = vst [vmem:[#allocation6] sm:$0xff] (%p84_p2), %v96_v2  ;;  %99 = vst [vmem:[#allocation6 + $0x8] sm:$0xff] (%p84_p2), %v97_v3  ;;  %p221_p3 = scmp.ne.s32.totalorder (%p84_p2), %s106_s10, %s220_s11  ;;  %p226_p5 = scmp.lt.s32.totalorder (%p84_p2), %s220_s11, %s220_s11 }
  0x3c   :  { %p227_p6 = por (%p84_p2), %p226_p5, %p225_p4 }
  0x3e   :  { %p228_p7 = pnand (%p84_p2), %p227_p6, %p221_p3 }
  0x40   :  { %231 = shalt.err (!%p228_p7)
}
  0x41   :  { %s232_s13 = scalar_lea.hbm %s329_s2, 256 }
  0x42   :  { %p233_p8 = scmp.ne.s32.totalorder %s329_s2, %s232_s13  ;;  %p236_p9 = scmp.lt.u32.totalorder %s232_s13, %s329_s2 }
  0x44   :  { %p238_p10 = pnand %p236_p9, %p233_p8 }
  0x46   :  { %241 = shalt.err (!%p238_p10)
}
  0x47   :  { %s267_s18 = smov 128   ;;  %s268_s19 = smov 8  }
  0x48   :  { %111 = dma.vmem_to_hbm [thread:$0]  %s106_s10, 256, %s329_s2, [#allocation7], %s267_s18, %s267_s18, %s268_s19  }
  0x49   :  { %254 = dma.done.wait [#allocation7], 256  }
  0x4a   :  { %255 = vsyncadd [#allocation7], 4294967040 }
  0x4b   :  { %115 = vsyncpa [#allocation7], 1 }
  0x4c   :  { %116 = vsyncmov [#allocation3] }
  0x4f   :  { %s117_s22 = vpop.sfrf %116 }
  0x50   :  { %p162_p11 = scmp.ne.s32.totalorder %s117_s22, 0 }
  0x52   :  { %121 = shalt.err (%p162_p11)  }
  0x53   :  { %123 = vsyncmov [#allocation3 + $0x1] }
  0x56   :  { %s124_s23 = vpop.sfrf %123 }
  0x57   :  { %p163_p12 = scmp.ne.s32.totalorder %s124_s23, 0 }
  0x59   :  { %128 = shalt.err (%p163_p12)  }

</bundles_post_ra>
